<compile_context>
chip_gen: v6e
topology: v6e:2x2x1
jax: 0.10.0
libtpu: 0.0.40
codegen_flags: <defaults>
</compile_context>

<pallas_src>
import jax
import jax.numpy as jnp
from jax.experimental import pallas as pl
from jax.experimental.pallas import tpu as pltpu

_LANE = 128
_TILE_M_MAX = 2048  # sublane tile of the (M, 128) position slab; multiple of 8


def _round_up(a: int, b: int) -> int:
    return -(-a // b) * b


def _fused_conv_sigmoid_kernel(wb_ref, x_ref, o_ref):
    """sigmoid(W_eff @ x + b_eff) on a lane-dense (C, TM, 128) block.

    wb_ref: (C*C + C,) f32 in SMEM, packed [W_eff row-major (o-major), b_eff].
    x_ref / o_ref: (C, TM, 128) f32 blocks in VMEM (one batch image per block).
    """
    c = x_ref.shape[0]
    xs = [x_ref[ch] for ch in range(c)]            # each (TM, 128), full vregs

    # Single folded channel mix: y_o = sigmoid(sum_i W_eff[o, i] * x_i + b_eff[o])
    for o in range(c):
        acc = wb_ref[o * c] * xs[0]                # VPU broadcast-scalar FMAs
        for i in range(1, c):
            acc = acc + wb_ref[o * c + i] * xs[i]
        acc = acc + wb_ref[c * c + o]
        o_ref[o] = jax.nn.sigmoid(acc).astype(o_ref.dtype)   # EUP logistic


@jax.jit
def sample_module3_forward(x_nchw, w0, b0, w1, b1):
    """x_nchw: (N, C, H, W); w*: (C, C, 1, 1); b*: (C,).  Returns (N, C, H, W)."""
    n, c, h, w = x_nchw.shape
    hw = h * w

    # ---- fold the two 1x1 convs into one affine channel mix (wrapper-side) ----
    w0m = w0.reshape(c, c).astype(jnp.float32)
    w1m = w1.reshape(c, c).astype(jnp.float32)
    w_eff = jnp.dot(w1m, w0m, precision=jax.lax.Precision.HIGHEST)
    b_eff = (jnp.dot(w1m, b0.astype(jnp.float32),
                     precision=jax.lax.Precision.HIGHEST)
             + b1.astype(jnp.float32))
    wb = jnp.concatenate([w_eff.reshape(c * c), b_eff.reshape(c)])

    # ---- zero-copy lane-dense view: (N, C, H, W) -> (N*C, M, 128) -------------
    x2d = x_nchw.reshape(n * c, hw)                # free (contiguous) reshape

    m_raw = -(-hw // _LANE)                        # ceil(HW / 128)
    if m_raw <= _TILE_M_MAX:
        tile_m = m_raw                             # single spatial tile
        if n == 1 and m_raw >= 16:
            # v7x megacore: guarantee >= 2 parallel grid steps when N == 1.
            tile_m = _round_up(-(-m_raw // 2), 8)
    else:
        tile_m = _TILE_M_MAX
    m = _round_up(m_raw, tile_m)
    hw_pad = m * _LANE
    if hw_pad != hw:
        # Fallback only for ragged H*W: positions are independent, zero-padding
        # is harmless and sliced off below.  (Not taken for H*W % 128 == 0.)
        x2d = jnp.pad(x2d, ((0, 0), (0, hw_pad - hw)))
    x_blk = x2d.reshape(n * c, m, _LANE)           # free reshape

    grid = (n, m // tile_m)
    out_blk = pl.pallas_call(
        _fused_conv_sigmoid_kernel,
        out_shape=jax.ShapeDtypeStruct((n * c, m, _LANE), x_blk.dtype),
        grid_spec=pltpu.PrefetchScalarGridSpec(
            num_scalar_prefetch=0,
            grid=grid,
            in_specs=[
                # 12 folded scalars, delivered once to SMEM.
                pl.BlockSpec(memory_space=pltpu.MemorySpace.SMEM),
                # One batch image (all C channels) x one spatial tile per step.
                pl.BlockSpec((c, tile_m, _LANE), lambda b, j: (b, j, 0)),
            ],
            out_specs=pl.BlockSpec((c, tile_m, _LANE), lambda b, j: (b, j, 0)),
        ),
        compiler_params=pltpu.CompilerParams(
            dimension_semantics=("parallel", "parallel"),
            vmem_limit_bytes=32 << 20,
        ),
    )(wb, x_blk)

    # ---- back to NCHW (free when no padding was needed) -----------------------
    out_flat = out_blk.reshape(n, c, hw_pad)
    if hw_pad != hw:
        out_flat = out_flat[:, :, :hw]
    return out_flat.reshape(n, c, h, w)


def _init_conv_params(key, c):
    """Deterministic PyTorch-style Conv2d init: U(-1/sqrt(fan_in), 1/sqrt(fan_in))."""
    kw, kb = jax.random.split(key)
    bound = 1.0 / jnp.sqrt(jnp.float32(c))  # fan_in = c * 1 * 1
    w = jax.random.uniform(kw, (c, c, 1, 1), jnp.float32, -bound, bound)
    b = jax.random.uniform(kb, (c,), jnp.float32, -bound, bound)
    return w, b


def _reference(x_nchw, w0, b0, w1, b1):
    """Pure-JAX reference of the (un-folded) two 1x1 convs + sigmoid."""
    def conv1x1(x, wt, b):
        w2 = wt.reshape(wt.shape[0], wt.shape[1])
        y = jnp.einsum("nihw,oi->nohw", x, w2,
                       precision=jax.lax.Precision.HIGHEST)
        return y + b[None, :, None, None]
    return jax.nn.sigmoid(conv1x1(conv1x1(x_nchw, w0, b0), w1, b1))


if __name__ == "__main__":
    key = jax.random.PRNGKey(0)
    kx, k0, k1 = jax.random.split(key, 3)

    N, C, H, W = 2, 3, 16, 16  # module defaults: num_features=3, kernel_size=1
    x = jax.random.normal(kx, (N, C, H, W), jnp.float32)
    w0, b0 = _init_conv_params(k0, C)
    w1, b1 = _init_conv_params(k1, C)

    out = jax.block_until_ready(sample_module3_forward(x, w0, b0, w1, b1))
    ref = _reference(x, w0, b0, w1, b1)

    assert out.shape == (N, C, H, W)
    assert jnp.allclose(out, ref, atol=1e-5, rtol=1e-5), float(
        jnp.max(jnp.abs(out - ref)))

    print("KERNEL_OK")
</pallas_src>

<mosaic_0001>
module attributes {stable_mosaic.version = 11 : i64} {
  func.func @_fused_conv_sigmoid_kernel(%arg0: i32, %arg1: i32, %arg2: memref<12xf32, #tpu.memory_space<smem>>, %arg3: memref<3x2x128xf32, #tpu.memory_space<vmem>>, %arg4: memref<3x2x128xf32, #tpu.memory_space<vmem>>) attributes {dimension_semantics = [#tpu.dimension_semantics<parallel>, #tpu.dimension_semantics<parallel>], iteration_bounds = array<i64: 2, 1>, scalar_prefetch = 0 : i64, scratch_operands = 0 : i64, tpu.core_type = #tpu.core_type<tc>, window_params = [{transform_indices = @transform_0, window_bounds = array<i64: 12>}, {transform_indices = @transform_1, window_bounds = array<i64: 3, 2, 128>}, {transform_indices = @transform_2, window_bounds = array<i64: 3, 2, 128>}]} {
    %c0 = arith.constant 0 : index
    %c0_0 = arith.constant 0 : index
    %c0_1 = arith.constant 0 : index
    %0 = vector.load %arg3[%c0, %c0_0, %c0_1] : memref<3x2x128xf32, #tpu.memory_space<vmem>>, vector<1x2x128xf32>
    %1 = vector.shape_cast %0 : vector<1x2x128xf32> to vector<2x128xf32>
    %c1 = arith.constant 1 : index
    %c0_2 = arith.constant 0 : index
    %c0_3 = arith.constant 0 : index
    %2 = vector.load %arg3[%c1, %c0_2, %c0_3] : memref<3x2x128xf32, #tpu.memory_space<vmem>>, vector<1x2x128xf32>
    %3 = vector.shape_cast %2 : vector<1x2x128xf32> to vector<2x128xf32>
    %c2 = arith.constant 2 : index
    %c0_4 = arith.constant 0 : index
    %c0_5 = arith.constant 0 : index
    %4 = vector.load %arg3[%c2, %c0_4, %c0_5] : memref<3x2x128xf32, #tpu.memory_space<vmem>>, vector<1x2x128xf32>
    %5 = vector.shape_cast %4 : vector<1x2x128xf32> to vector<2x128xf32>
    %c0_6 = arith.constant 0 : index
    %6 = memref.load %arg2[%c0_6] : memref<12xf32, #tpu.memory_space<smem>>
    %7 = vector.broadcast %6 : f32 to vector<2x128xf32>
    %8 = arith.mulf %7, %1 : vector<2x128xf32>
    %c1_7 = arith.constant 1 : index
    %9 = memref.load %arg2[%c1_7] : memref<12xf32, #tpu.memory_space<smem>>
    %10 = vector.broadcast %9 : f32 to vector<2x128xf32>
    %11 = arith.mulf %10, %3 : vector<2x128xf32>
    %12 = arith.addf %8, %11 : vector<2x128xf32>
    %c2_8 = arith.constant 2 : index
    %13 = memref.load %arg2[%c2_8] : memref<12xf32, #tpu.memory_space<smem>>
    %14 = vector.broadcast %13 : f32 to vector<2x128xf32>
    %15 = arith.mulf %14, %5 : vector<2x128xf32>
    %16 = arith.addf %12, %15 : vector<2x128xf32>
    %c9 = arith.constant 9 : index
    %17 = memref.load %arg2[%c9] : memref<12xf32, #tpu.memory_space<smem>>
    %18 = vector.broadcast %17 : f32 to vector<2x128xf32>
    %19 = arith.addf %16, %18 : vector<2x128xf32>
    %20 = arith.negf %19 : vector<2x128xf32>
    %21 = math.exp %20 : vector<2x128xf32>
    %cst = arith.constant 1.000000e+00 : f32
    %22 = vector.broadcast %cst : f32 to vector<2x128xf32>
    %23 = arith.addf %22, %21 : vector<2x128xf32>
    %24 = arith.divf %22, %23 : vector<2x128xf32>
    %c0_9 = arith.constant 0 : index
    %c0_10 = arith.constant 0 : index
    %c0_11 = arith.constant 0 : index
    %25 = vector.load %arg4[%c0_9, %c0_10, %c0_11] : memref<3x2x128xf32, #tpu.memory_space<vmem>>, vector<1x2x128xf32>
    %26 = vector.shape_cast %25 : vector<1x2x128xf32> to vector<2x128xf32>
    %27 = vector.shape_cast %24 : vector<2x128xf32> to vector<1x2x128xf32>
    tpu.vector_store %arg4[%c0_9, %c0_10, %c0_11], %27 {strides = array<i32>} : memref<3x2x128xf32, #tpu.memory_space<vmem>>, vector<1x2x128xf32>,
    %c3 = arith.constant 3 : index
    %28 = memref.load %arg2[%c3] : memref<12xf32, #tpu.memory_space<smem>>
    %29 = vector.broadcast %28 : f32 to vector<2x128xf32>
    %30 = arith.mulf %29, %1 : vector<2x128xf32>
    %c4 = arith.constant 4 : index
    %31 = memref.load %arg2[%c4] : memref<12xf32, #tpu.memory_space<smem>>
    %32 = vector.broadcast %31 : f32 to vector<2x128xf32>
    %33 = arith.mulf %32, %3 : vector<2x128xf32>
    %34 = arith.addf %30, %33 : vector<2x128xf32>
    %c5 = arith.constant 5 : index
    %35 = memref.load %arg2[%c5] : memref<12xf32, #tpu.memory_space<smem>>
    %36 = vector.broadcast %35 : f32 to vector<2x128xf32>
    %37 = arith.mulf %36, %5 : vector<2x128xf32>
    %38 = arith.addf %34, %37 : vector<2x128xf32>
    %c10 = arith.constant 10 : index
    %39 = memref.load %arg2[%c10] : memref<12xf32, #tpu.memory_space<smem>>
    %40 = vector.broadcast %39 : f32 to vector<2x128xf32>
    %41 = arith.addf %38, %40 : vector<2x128xf32>
    %42 = arith.negf %41 : vector<2x128xf32>
    %43 = math.exp %42 : vector<2x128xf32>
    %cst_12 = arith.constant 1.000000e+00 : f32
    %44 = vector.broadcast %cst_12 : f32 to vector<2x128xf32>
    %45 = arith.addf %44, %43 : vector<2x128xf32>
    %46 = arith.divf %44, %45 : vector<2x128xf32>
    %c1_13 = arith.constant 1 : index
    %c0_14 = arith.constant 0 : index
    %c0_15 = arith.constant 0 : index
    %47 = vector.load %arg4[%c1_13, %c0_14, %c0_15] : memref<3x2x128xf32, #tpu.memory_space<vmem>>, vector<1x2x128xf32>
    %48 = vector.shape_cast %47 : vector<1x2x128xf32> to vector<2x128xf32>
    %49 = vector.shape_cast %46 : vector<2x128xf32> to vector<1x2x128xf32>
    tpu.vector_store %arg4[%c1_13, %c0_14, %c0_15], %49 {strides = array<i32>} : memref<3x2x128xf32, #tpu.memory_space<vmem>>, vector<1x2x128xf32>,
    %c6 = arith.constant 6 : index
    %50 = memref.load %arg2[%c6] : memref<12xf32, #tpu.memory_space<smem>>
    %51 = vector.broadcast %50 : f32 to vector<2x128xf32>
    %52 = arith.mulf %51, %1 : vector<2x128xf32>
    %c7 = arith.constant 7 : index
    %53 = memref.load %arg2[%c7] : memref<12xf32, #tpu.memory_space<smem>>
    %54 = vector.broadcast %53 : f32 to vector<2x128xf32>
    %55 = arith.mulf %54, %3 : vector<2x128xf32>
    %56 = arith.addf %52, %55 : vector<2x128xf32>
    %c8 = arith.constant 8 : index
    %57 = memref.load %arg2[%c8] : memref<12xf32, #tpu.memory_space<smem>>
    %58 = vector.broadcast %57 : f32 to vector<2x128xf32>
    %59 = arith.mulf %58, %5 : vector<2x128xf32>
    %60 = arith.addf %56, %59 : vector<2x128xf32>
    %c11 = arith.constant 11 : index
    %61 = memref.load %arg2[%c11] : memref<12xf32, #tpu.memory_space<smem>>
    %62 = vector.broadcast %61 : f32 to vector<2x128xf32>
    %63 = arith.addf %60, %62 : vector<2x128xf32>
    %64 = arith.negf %63 : vector<2x128xf32>
    %65 = math.exp %64 : vector<2x128xf32>
    %cst_16 = arith.constant 1.000000e+00 : f32
    %66 = vector.broadcast %cst_16 : f32 to vector<2x128xf32>
    %67 = arith.addf %66, %65 : vector<2x128xf32>
    %68 = arith.divf %66, %67 : vector<2x128xf32>
    %c2_17 = arith.constant 2 : index
    %c0_18 = arith.constant 0 : index
    %c0_19 = arith.constant 0 : index
    %69 = vector.load %arg4[%c2_17, %c0_18, %c0_19] : memref<3x2x128xf32, #tpu.memory_space<vmem>>, vector<1x2x128xf32>
    %70 = vector.shape_cast %69 : vector<1x2x128xf32> to vector<2x128xf32>
    %71 = vector.shape_cast %68 : vector<2x128xf32> to vector<1x2x128xf32>
    tpu.vector_store %arg4[%c2_17, %c0_18, %c0_19], %71 {strides = array<i32>} : memref<3x2x128xf32, #tpu.memory_space<vmem>>, vector<1x2x128xf32>,
    return
  }
  func.func @transform_0(%arg0: i32, %arg1: i32) -> i32 {
    %c0_i32 = arith.constant 0 : i32
    %c0_i32_0 = arith.constant 0 : i32
    return %c0_i32 : i32
  }
  func.func @transform_1(%arg0: i32, %arg1: i32) -> (i32, i32, i32) {
    %c0_i32 = arith.constant 0 : i32
    %c0_i32_0 = arith.constant 0 : i32
    return %arg0, %arg1, %c0_i32 : i32, i32, i32
  }
  func.func @transform_2(%arg0: i32, %arg1: i32) -> (i32, i32, i32) {
    %c0_i32 = arith.constant 0 : i32
    %c0_i32_0 = arith.constant 0 : i32
    return %arg0, %arg1, %c0_i32 : i32, i32, i32
  }
}

</mosaic_0001>

<bundles_post_ra>
// kernel: sample_module3_forward.1
= control target key start
LH: loop header
LB: loop body
LE: loop exit
PB: predicated region body
PF: predicated region fallthrough
CT: control target
= control target key end

     0   :  { %7 = vsyncpa [#allocation3], 0  ;;  %s487_s9 = smov 0   ;;  %s489_s10 = smov 0   ;;  %s552_s0 = inlined_call_operand.vmem [shape: f32[12], index: 0, kind: input, shape index: {}]   ;;  %s553_s1 = inlined_call_operand.vmem [shape: f32[6,2,128], index: 1, kind: input, shape index: {}]   ;;  %s554_s2 = inlined_call_operand.vmem [shape: f32[6,2,128], index: 2, kind: output, shape index: {}]  }
   0x1   :  { %s491_s11 = smov 0  }
   0x2 LB: > { %s352_s12 = sadd.s32 4294967295, %s469_s11   ;;  %s25_s13 = sadd.s32 1, %s465_s10  ;;  %s469_s11 = sphi %s491_s11, %s13_s11   ;;  %s465_s10 = sphi %s489_s10, %s558_s10   ;;  %s461_s9 = sphi %s487_s9, %s557_s9  }
   0x3   : > { %p27_p0 = scmp.ge.s32.totalorder %s25_s13, 2  ;;  %p354_p1 = scmp.ge.s32.totalorder %s469_s11, 1 }
   0x4   : > { %p107_p2 = scmp.lt.s32.totalorder %s469_s11, 3  ;;  %p512_p4 = scmp.eq.s32.totalorder %s352_s12, 0 }
   0x5   : > { %s560_s13 = smov (%p27_p0, %s25_s13), 0  ;;  %s120_s18 = sshll.u32 %s552_s0, 4  ;;  %s121_s18 = int_to_ptr.vmem [resolvable:$true] %s120_s18 }
   0x6   : > { %p508_p3 = pnand %p354_p1, %p107_p2  ;;  %s428_s19 = scalar_lea.vmem %s121_s18, 16 }
   0x7   : > { %p429_p7 = scmp.ne.s32.totalorder %s121_s18, %s428_s19  ;;  %p436_p11 = scmp.lt.s32.totalorder %s121_s18, %s121_s18 }
   0x8   : > { %p385_p5 = pneg %p508_p3  ;;  %p437_p12 = scmp.lt.s32.totalorder %s428_s19, %s428_s19 }
   0xa   : > { %p386_p6 = pnand %p512_p4, %p385_p5  ;;  %p438_p13 = por %p437_p12, %p436_p11 }
   0xc   : > { %p430_p8 = pneg %p386_p6 }
   0xe   : > { %p431_p9 = pnand %p430_p8, %p429_p7 }
  0x10   : > { %p432_p10 = pneg %p431_p9 }
  0x12   : > { %p439_p0 = pnand %p438_p13, %p432_p10 }
  0x14   : > { %442 = shalt.err (!%p439_p0)
}
  0x15   : > { %s471_s20 = smov [#allocation2]   ;;  %145 = sbr.rel (%p508_p3) target bundleno = 87 (0x57), region = 28 }
  0x16   : > { %388 = dma.vmem_to_smem (!%p386_p6), %s121_s18, 16, %s471_s20, [#allocation3]  }
  0x1a   : > { %456 = dma.done.wait (%p512_p4), [#allocation3], 16  }
  0x1b   : > { %458 = vsyncadd (%p512_p4), [#allocation3], 4294967280 }
  0x1c   : > { %151 = sfence }
  0x1d   : > { %s174_s21 = smul.u32 3, %s461_s9  ;;  %s197_s22 = sld [smem:[#allocation2]] }
  0x1e   : > { %s363_s23 = sld [smem:[#allocation2 + $0x1]] }
  0x1f   : > { %p175_p1 = scmp.lt.s32.totalorder %s174_s21, 5  ;;  %s364_s24 = sld [smem:[#allocation2 + $0x2]] }
  0x20   : > { %s365_s25 = sld [smem:[#allocation2 + $0x9]] }
  0x21   : > { %s562_s21 = smov (!%p175_p1, %s174_s21), 5  ;;  %s367_s26 = sld [smem:[#allocation2 + $0x3]] }
  0x22   : > { %s359_s27 = sshll.u32 %s562_s21, 1  ;;  %s368_s28 = sld [smem:[#allocation2 + $0x4]] }
  0x23   : > { %v198_v0 = vstv %s197_s22  ;;  %s181_s3 = scalar_lea.vmem %s553_s1, %s359_s27  ;;  %s369_s4 = sld [smem:[#allocation2 + $0x5]] }
  0x24   : > { %v201_v1 = vstv %s363_s23  ;;  %v192_v2 = vld [vmem:[%s181_s3] sm:$0x3]  ;;  %v361_v3 = vld [vmem:[%s181_s3 + $0x2] sm:$0x3]  ;;  %v362_v4 = vld [vmem:[%s181_s3 + $0x4] sm:$0x3]  ;;  %s190_s15 = scalar_lea.vmem %s554_s2, %s359_s27 }
  0x25   : > { %v205_v5 = vstv %s364_s24  ;;  %v199_v6 = vmul.f32 %v198_v0, %v192_v2  ;;  %v202_v7 = vmul.f32 %v361_v3, %v201_v1  ;;  %s370_s5 = sld [smem:[#allocation2 + $0xa]] }
  0x26   : > { %v206_v8 = vmul.f32 %v362_v4, %v205_v5  ;;  %s373_s6 = sld [smem:[#allocation2 + $0x6]]  ;;  %v209_v11 = vstv %s365_s25 }
  0x27   : > { %v203_v9 = vadd.f32 %v202_v7, %v199_v6  ;;  %v219_v10 = vstv %s367_s26  ;;  %s374_s7 = sld [smem:[#allocation2 + $0x7]] }
  0x28   : > { %v220_v12 = vmul.f32 %v219_v10, %v192_v2  ;;  %v222_v13 = vstv %s368_s28  ;;  %s375_s8 = sld [smem:[#allocation2 + $0x8]] }
  0x29   : > { %v207_v14 = vadd.f32 %v206_v8, %v203_v9  ;;  %v223_v15 = vmul.f32 %v361_v3, %v222_v13  ;;  %s376_s9 = sld [smem:[#allocation2 + $0xb]]  ;;  %v226_v18 = vstv %s369_s4 }
  0x2a   : > { %v227_v19 = vmul.f32 %v362_v4, %v226_v18 }
  0x2b   : > { %v210_v16 = vadd.f32 %v209_v11, %v207_v14  ;;  %v224_v17 = vadd.f32 %v223_v15, %v220_v12  ;;  %v230_v21 = vstv %s370_s5 }
  0x2c   : > { %v241_v22 = vstv %s373_s6 }
  0x2d   : > { %v366_v20 = vmul.f32 -1.442695, %v210_v16  ;;  %v228_v23 = vadd.f32 %v227_v19, %v224_v17  ;;  %v242_v24 = vmul.f32 %v241_v22, %v192_v2  ;;  %v244_v25 = vstv %s374_s7 }
  0x2e   : > { %v245_v26 = vmul.f32 %v361_v3, %v244_v25  ;;  %v248_v27 = vstv %s375_s8 }
  0x2f   : > { %416 = vpow2.f32 %v366_v20  ;;  %v231_v28 = vadd.f32 %v230_v21, %v228_v23  ;;  %v249_v29 = vmul.f32 %v362_v4, %v248_v27  ;;  %v252_v32 = vstv %s376_s9 }
  0x30   : > { %v246_v30 = vadd.f32 %v245_v26, %v242_v24 }
  0x31   : > { %v371_v31 = vmul.f32 -1.442695, %v231_v28 }
  0x32   : > { %v250_v33 = vadd.f32 %v249_v29, %v246_v30 }
  0x33   : > { %418 = vpow2.f32 %v371_v31 }
  0x34   : > { %v253_v34 = vadd.f32 %v252_v32, %v250_v33 }
  0x36   : > { %v377_v35 = vmul.f32 -1.442695, %v253_v34 }
  0x38   : > { %420 = vpow2.f32 %v377_v35 }
  0x3c   : > { %v417_v36 = vpop.eup %416 }
  0x3d   : > { %v214_v37 = vadd.f32 1.0, %v417_v36 }
  0x3f   : > { %422 = vrcp.f32 %v214_v37 }
  0x40   : > { %v419_v38 = vpop.eup %418 }
  0x41   : > { %v235_v39 = vadd.f32 1.0, %v419_v38 }
  0x43   : > { %424 = vrcp.f32 %v235_v39 }
  0x45   : > { %v421_v40 = vpop.eup %420 }
  0x46   : > { %v257_v41 = vadd.f32 1.0, %v421_v40 }
  0x48   : > { %426 = vrcp.f32 %v257_v41 }
  0x4c   : > { %v423_v42 = vpop.eup %422 }
  0x4d   : > { %217 = vst [vmem:[%s190_s15] sm:$0x3] %v423_v42 }
  0x50   : > { %v425_v43 = vpop.eup %424 }
  0x51   : > { %372 = vst [vmem:[%s190_s15 + $0x2] sm:$0x3] %v425_v43 }
  0x55   : > { %v427_v44 = vpop.eup %426 }
  0x56   : > { %378 = vst [vmem:[%s190_s15 + $0x4] sm:$0x3] %v427_v44 }
  0x57 PF: > { %s13_s11 = sadd.s32 1, %s469_s11   ;;  %s557_s9 = smov %s465_s10 }
  0x58   : > { %p10_p2 = scmp.ge.s32.totalorder %s13_s11, 4   ;;  %s558_s10 = smov %s560_s13 }
  0x5a   :  { %12 = sbr.rel (!%p10_p2) target bundleno = 2 (0x2), region = 67 }
  0x5f   :  { %290 = vsyncpa [#allocation3], 1 }
  0x60   :  { %292 = vsyncpa [#allocation3 + $0x1], 1 }

</bundles_post_ra>
